<compile_context>
chip_gen: v5e
topology: v5e:2x2
jax: 0.10.0
libtpu: 0.0.40
codegen_flags: <defaults>
</compile_context>

<pallas_src>
import functools

import jax
import jax.numpy as jnp
from jax.experimental import pallas as pl
from jax.experimental.pallas import tpu as pltpu

_EPS = 1e-5


def _round_up(x, m):
    return (x + m - 1) // m * m


# ---------------------------------------------------------------------------
# Fused Pallas kernel: all branches + residual for one sample (channel-major).
# ---------------------------------------------------------------------------

def _msconv_kernel(x_ref, wpw_ref, bpw_ref, wblk_ref, btc_ref, ps_ref, pb_ref,
                   o_ref, hp_ref, *, cb, ks, dilations, V, TV, F, res_mode):
    nb = len(dilations)
    c5 = (nb + 1) * cb              # channels that get ReLU (dilated + pool)
    Cout = (nb + 2) * cb
    L = hp_ref.shape[1]

    x2 = x_ref[0]                    # (Cin, T*V), channel-major, straight NCHW

    # All six branch 1x1 convs (+ folded BN) (+ the residual 1x1 conv) fused
    # into ONE matmul: (PWC, Cin) @ (Cin, T*V) -> (PWC, T*V), f32 accumulation.
    y2 = jnp.dot(wpw_ref[...], x2, preferred_element_type=jnp.float32)
    y2 = y2 + bpw_ref[...]

    # ReLU branches -> temporally zero-padded VMEM scratch.  Padding lives on
    # the flattened T*V lane axis; temporal shifts are exact multiples of V, so
    # no cross-joint mixing.  Post-ReLU values are >= 0, so zero padding is
    # also exact for the max-pool branch.  Only the two pad bands are zeroed;
    # the interior store starts at the 128-aligned offset F.
    hp_ref[:, 0:F] = jnp.zeros((c5, F), hp_ref.dtype)
    hp_ref[:, F + TV:L] = jnp.zeros((c5, L - F - TV), hp_ref.dtype)
    hp_ref[:, F:F + TV] = jnp.maximum(y2[:c5, :], 0.0).astype(hp_ref.dtype)

    # ONE block-diagonal matmul for ALL dilated temporal-conv branches
    # (Conv2d (ks,1), stride 1, dilation d) + folded BN.
    taps = []
    for b, dil in enumerate(dilations):
        pad_b = (ks + (ks - 1) * (dil - 1) - 1) // 2
        for k in range(ks):
            start = F + (k * dil - pad_b) * V
            taps.append(hp_ref[b * cb:(b + 1) * cb, start:start + TV])
    im2col = jnp.concatenate(taps, axis=0)                    # (nb*ks*cb, T*V)
    dil_out = jnp.dot(wblk_ref[...], im2col, preferred_element_type=jnp.float32)
    dil_out = dil_out + btc_ref[...]                          # (nb*cb, T*V)

    # Max-pool branch: MaxPool2d((3,1), stride 1, pad (1,0)) + BN.
    pc0 = nb * cb
    m = jnp.maximum(hp_ref[pc0:c5, F - V:F - V + TV], hp_ref[pc0:c5, F:F + TV])
    m = jnp.maximum(m, hp_ref[pc0:c5, F + V:F + V + TV]).astype(jnp.float32)
    pool_out = m * ps_ref[...] + pb_ref[...]                  # (cb, T*V)

    # Plain 1x1 branch (no ReLU) is rows [c5, c5+cb) of the fused matmul.
    out = jnp.concatenate([dil_out, pool_out, y2[c5:c5 + cb, :]], axis=0)

    if res_mode == "identity":
        out = out + x2.astype(jnp.float32)                    # Cin == Cout
    elif res_mode == "conv":
        out = out + y2[c5 + cb:c5 + cb + Cout, :]             # fused residual conv+BN
    # res_mode == "none": residual disabled.

    # Lane-dense store: lane dim is T*V, not Cout.
    o_ref[...] = out.reshape(o_ref.shape).astype(o_ref.dtype)


# ---------------------------------------------------------------------------
# Wrapper
# ---------------------------------------------------------------------------

def multiscale_temporal_conv(x_nchw, fused, *, compute_dtype=None):
    """Forward pass.  x_nchw: (N, Cin, T, V) -> (N, Cout, T, V)."""
    N, Cin, T, V = x_nchw.shape
    cb, ks, dils = fused["cb"], fused["kernel_size"], fused["dilations"]
    nb = len(dils)
    Cout = (nb + 2) * cb
    c5 = (nb + 1) * cb
    PWC = fused["w_pw_t"].shape[0]
    assert fused["w_pw_t"].shape[1] == Cin, "fused params do not match Cin"

    dt = compute_dtype if compute_dtype is not None else fused["w_pw_t"].dtype
    isz = jnp.dtype(dt).itemsize

    TV = T * V
    maxpad = max(1, max((ks + (ks - 1) * (d - 1) - 1) // 2 for d in dils))
    F = _round_up(maxpad * V, 128)         # 128-aligned interior start
    L = F + TV + maxpad * V                # padded scratch lane extent

    # Free reshapes / dtype cast only — no HBM transpose passes.
    x_flat = x_nchw.reshape(N, Cin, TV).astype(dt)
    w_pw = fused["w_pw_t"].astype(dt)
    w_blk = fused["w_blk_t"].astype(dt)

    # Real per-step VMEM footprint (double-buffered I/O blocks + weights +
    # scratch + main temporaries) -> explicit limit, clamped for v7x (64 MiB).
    step_bytes = (2 * Cin * TV * isz + 2 * Cout * TV * 4
                  + 2 * (w_pw.size + w_blk.size) * isz
                  + 2 * (PWC + nb * cb + 2 * cb) * 4
                  + c5 * L * isz + nb * ks * cb * TV * isz
                  + (PWC + nb * cb + cb + Cout) * TV * 4)
    vmem_limit = int(min(max(2 * step_bytes, 32 << 20), 64 << 20))

    kernel = functools.partial(
        _msconv_kernel, cb=cb, ks=ks, dilations=tuple(dils),
        V=V, TV=TV, F=F, res_mode=fused["res_mode"])

    out = pl.pallas_call(
        kernel,
        out_shape=jax.ShapeDtypeStruct((N, Cout, TV), jnp.float32),
        grid=(N,),
        in_specs=[
            pl.BlockSpec((1, Cin, TV), lambda n: (n, 0, 0)),
            pl.BlockSpec(w_pw.shape, lambda n: (0, 0)),
            pl.BlockSpec(fused["b_pw"].shape, lambda n: (0, 0)),
            pl.BlockSpec(w_blk.shape, lambda n: (0, 0)),
            pl.BlockSpec(fused["b_tc"].shape, lambda n: (0, 0)),
            pl.BlockSpec(fused["pool_scale"].shape, lambda n: (0, 0)),
            pl.BlockSpec(fused["pool_bias"].shape, lambda n: (0, 0)),
        ],
        out_specs=pl.BlockSpec((1, Cout, TV), lambda n: (n, 0, 0)),
        scratch_shapes=[pltpu.VMEM((c5, L), dt)],
        compiler_params=pltpu.CompilerParams(
            dimension_semantics=("parallel",), vmem_limit_bytes=vmem_limit),
    )(x_flat, w_pw, fused["b_pw"], w_blk, fused["b_tc"],
      fused["pool_scale"], fused["pool_bias"])

    return out.reshape(N, Cout, T, V)    # free reshape: output is already NCHW


# ---------------------------------------------------------------------------
# Parameters (mirrors weights_init) and BN folding / weight fusion
# ---------------------------------------------------------------------------

def init_params(key, in_channels, out_channels, kernel_size=3,
                dilations=(1, 2, 3, 4), residual=True):
    num_branches = len(dilations) + 2
    assert out_channels % num_branches == 0
    cb = out_channels // num_branches
    keys = iter(jax.random.split(key, 4 * num_branches + 8))

    def conv_w(shape, fan_out):      # kaiming_normal_(mode='fan_out')
        return jax.random.normal(next(keys), shape, jnp.float32) * jnp.sqrt(2.0 / fan_out)

    def bn(c):                       # gamma ~ N(1, 0.02), beta = 0
        return (1.0 + 0.02 * jax.random.normal(next(keys), (c,), jnp.float32),
                jnp.zeros((c,), jnp.float32))

    branches = []
    for d in dilations:
        pw_g, pw_be = bn(cb)
        tc_g, tc_be = bn(cb)
        branches.append(dict(
            pw_w=conv_w((in_channels, cb), cb), pw_b=jnp.zeros((cb,), jnp.float32),
            pw_gamma=pw_g, pw_beta=pw_be,
            tc_w=conv_w((kernel_size, cb, cb), cb * kernel_size),
            tc_b=jnp.zeros((cb,), jnp.float32),
            tc_gamma=tc_g, tc_beta=tc_be, dilation=d))

    pw_g, pw_be = bn(cb)
    pool_g, pool_be = bn(cb)
    branch_pool = dict(pw_w=conv_w((in_channels, cb), cb),
                       pw_b=jnp.zeros((cb,), jnp.float32),
                       pw_gamma=pw_g, pw_beta=pw_be,
                       pool_gamma=pool_g, pool_beta=pool_be)

    pw_g, pw_be = bn(cb)
    branch_1x1 = dict(pw_w=conv_w((in_channels, cb), cb),
                      pw_b=jnp.zeros((cb,), jnp.float32),
                      pw_gamma=pw_g, pw_beta=pw_be)

    if not residual:
        res_mode, res_params = "none", None
    elif in_channels == out_channels:
        res_mode, res_params = "identity", None
    else:                            # TemporalConv(in, out, ks=1) == 1x1 conv + BN
        g, be = bn(out_channels)
        res_params = dict(w=conv_w((in_channels, out_channels), out_channels),
                          b=jnp.zeros((out_channels,), jnp.float32),
                          gamma=g, beta=be)
        res_mode = "conv"

    return dict(branches=branches, branch_pool=branch_pool, branch_1x1=branch_1x1,
                residual=res_params, res_mode=res_mode,
                kernel_size=kernel_size, dilations=tuple(dilations), cb=cb)


def fuse_params(raw, dtype=jnp.float32):
    """Fold eval-mode BN (mean=0, var=1) into the conv weights, pre-transpose
    everything for channel-major compute, and build the block-diagonal
    temporal-conv weight for the single fused temporal matmul."""
    cb, ks = raw["cb"], raw["kernel_size"]
    dils = raw["dilations"]
    nb = len(dils)

    def fold_pw(p):                  # 1x1 conv + BN -> rows (cb, Cin), bias (cb,)
        scale = p["pw_gamma"] / jnp.sqrt(1.0 + _EPS)
        return (p["pw_w"] * scale[None, :]).T, p["pw_b"] * scale + p["pw_beta"]

    pw_rows, pw_bias, blk_rows, tc_bias = [], [], [], []
    for b, p in enumerate(raw["branches"]):
        w, bias = fold_pw(p)
        pw_rows.append(w); pw_bias.append(bias)
        scale = p["tc_gamma"] / jnp.sqrt(1.0 + _EPS)
        w_tc = p["tc_w"] * scale[None, None, :]                 # (ks, cb, cb)
        tc_bias.append(p["tc_b"] * scale + p["tc_beta"])
        wb = jnp.concatenate([w_tc[k].T for k in range(ks)], axis=1)  # (cb, ks*cb)
        row = [jnp.zeros((cb, ks * cb), jnp.float32)] * nb
        row[b] = wb
        blk_rows.append(jnp.concatenate(row, axis=1))

    p = raw["branch_pool"]
    w, bias = fold_pw(p)
    pw_rows.append(w); pw_bias.append(bias)
    pool_scale = p["pool_gamma"] / jnp.sqrt(1.0 + _EPS)
    pool_bias = p["pool_beta"]

    p = raw["branch_1x1"]
    w, bias = fold_pw(p)
    pw_rows.append(w); pw_bias.append(bias)

    if raw["res_mode"] == "conv":
        p = raw["residual"]
        scale = p["gamma"] / jnp.sqrt(1.0 + _EPS)
        pw_rows.append((p["w"] * scale[None, :]).T)
        pw_bias.append(p["b"] * scale + p["beta"])

    return dict(
        w_pw_t=jnp.concatenate(pw_rows, axis=0).astype(dtype),    # (PWC, Cin)
        b_pw=jnp.concatenate(pw_bias)[:, None],                   # (PWC, 1) f32
        w_blk_t=jnp.concatenate(blk_rows, axis=0).astype(dtype),  # (nb*cb, nb*ks*cb)
        b_tc=jnp.concatenate(tc_bias)[:, None],                   # (nb*cb, 1) f32
        pool_scale=pool_scale[:, None], pool_bias=pool_bias[:, None],
        res_mode=raw["res_mode"], cb=cb, kernel_size=ks, dilations=dils)


# ---------------------------------------------------------------------------
# Pure-jnp reference (mirrors the PyTorch forward, eval-mode BN) for checking
# ---------------------------------------------------------------------------

def reference_forward(x_nchw, raw):
    def bn(y, gamma, beta):
        return y / jnp.sqrt(1.0 + _EPS) * gamma + beta

    ks = raw["kernel_size"]
    x = jnp.transpose(x_nchw.astype(jnp.float32), (0, 3, 2, 1))   # (N, V, T, Cin)
    T = x.shape[2]

    def pw(h, w, b, gamma, beta):
        return bn(jnp.einsum("nvtc,cd->nvtd", h, w) + b, gamma, beta)

    outs = []
    for p in raw["branches"]:
        h = jnp.maximum(pw(x, p["pw_w"], p["pw_b"], p["pw_gamma"], p["pw_beta"]), 0.0)
        d = p["dilation"]
        pad = (ks + (ks - 1) * (d - 1) - 1) // 2
        hp = jnp.pad(h, ((0, 0), (0, 0), (pad, pad), (0, 0)))
        y = jnp.zeros(h.shape[:3] + (p["tc_w"].shape[-1],), jnp.float32) + p["tc_b"]
        for k in range(ks):
            y = y + jnp.einsum("nvtc,cd->nvtd", hp[:, :, k * d:k * d + T, :], p["tc_w"][k])
        outs.append(bn(y, p["tc_gamma"], p["tc_beta"]))

    p = raw["branch_pool"]
    h = jnp.maximum(pw(x, p["pw_w"], p["pw_b"], p["pw_gamma"], p["pw_beta"]), 0.0)
    hp = jnp.pad(h, ((0, 0), (0, 0), (1, 1), (0, 0)), constant_values=-jnp.inf)
    m = jnp.maximum(jnp.maximum(hp[:, :, 0:T], hp[:, :, 1:T + 1]), hp[:, :, 2:T + 2])
    outs.append(bn(m, p["pool_gamma"], p["pool_beta"]))

    p = raw["branch_1x1"]
    outs.append(pw(x, p["pw_w"], p["pw_b"], p["pw_gamma"], p["pw_beta"]))

    out = jnp.concatenate(outs, axis=-1)
    if raw["res_mode"] == "identity":
        out = out + x
    elif raw["res_mode"] == "conv":
        p = raw["residual"]
        out = out + pw(x, p["w"], p["b"], p["gamma"], p["beta"])
    return jnp.transpose(out, (0, 3, 2, 1))


# ---------------------------------------------------------------------------

if __name__ == "__main__":
    key = jax.random.PRNGKey(0)
    kx, kp, kp2, kx2 = jax.random.split(key, 4)

    # Config A: Cin != Cout -> fused residual 1x1 conv + BN.
    N, Cin, T, V = 2, 4, 16, 16
    Cout = 12                       # 6 branches * 2 channels each
    x = jax.random.normal(kx, (N, Cin, T, V), jnp.float32)
    raw = init_params(kp, Cin, Cout, kernel_size=3, dilations=(1, 2, 3, 4))
    ref = jax.block_until_ready(reference_forward(x, raw))

    fused = fuse_params(raw, jnp.float32)
    out = jax.block_until_ready(
        jax.jit(lambda a: multiscale_temporal_conv(a, fused))(x))
    assert out.shape == (N, Cout, T, V), out.shape
    assert bool(jnp.all(jnp.isfinite(out))), "non-finite output"
    err = float(jnp.max(jnp.abs(out - ref)))
    assert err < 1e-3, f"f32 mismatch vs reference: max abs err {err}"

    # bf16 storage / MXU operands (f32 accumulation) — looser tolerance.
    fused_bf16 = fuse_params(raw, jnp.bfloat16)
    out_bf = jax.block_until_ready(
        jax.jit(lambda a: multiscale_temporal_conv(a, fused_bf16))(x))
    rel = float(jnp.max(jnp.abs(out_bf - ref)) / (jnp.max(jnp.abs(ref)) + 1e-6))
    assert rel < 3e-2, f"bf16 mismatch vs reference: rel err {rel}"

    # Config B: Cin == Cout -> identity residual path.
    x2 = jax.random.normal(kx2, (N, Cout, T, V), jnp.float32)
    raw2 = init_params(kp2, Cout, Cout, kernel_size=3, dilations=(1, 2, 3, 4))
    fused2 = fuse_params(raw2, jnp.float32)
    out2 = jax.block_until_ready(
        jax.jit(lambda a: multiscale_temporal_conv(a, fused2))(x2))
    err2 = float(jnp.max(jnp.abs(out2 - reference_forward(x2, raw2))))
    assert err2 < 1e-3, f"identity-residual mismatch: max abs err {err2}"

    print("KERNEL_OK")
</pallas_src>

<mosaic_0001>
module attributes {stable_mosaic.version = 11 : i64} {
  func.func @_msconv_kernel(%arg0: i32, %arg1: memref<1x4x256xf32, #tpu.memory_space<vmem>>, %arg2: memref<24x4xf32, #tpu.memory_space<vmem>>, %arg3: memref<24x1xf32, #tpu.memory_space<vmem>>, %arg4: memref<8x24xf32, #tpu.memory_space<vmem>>, %arg5: memref<8x1xf32, #tpu.memory_space<vmem>>, %arg6: memref<2x1xf32, #tpu.memory_space<vmem>>, %arg7: memref<2x1xf32, #tpu.memory_space<vmem>>, %arg8: memref<1x12x256xf32, #tpu.memory_space<vmem>>, %arg9: memref<10x448xf32, #tpu.memory_space<vmem>>) attributes {dimension_semantics = [#tpu.dimension_semantics<parallel>], iteration_bounds = array<i64: 2>, scalar_prefetch = 0 : i64, scratch_operands = 1 : i64, tpu.core_type = #tpu.core_type<tc>, window_params = [{transform_indices = @transform_0, window_bounds = array<i64: 1, 4, 256>}, {pipeline_mode = #tpu.pipeline_mode<synchronous>, transform_indices = @transform_1, window_bounds = array<i64: 24, 4>}, {pipeline_mode = #tpu.pipeline_mode<synchronous>, transform_indices = @transform_2, window_bounds = array<i64: 24, 1>}, {pipeline_mode = #tpu.pipeline_mode<synchronous>, transform_indices = @transform_3, window_bounds = array<i64: 8, 24>}, {pipeline_mode = #tpu.pipeline_mode<synchronous>, transform_indices = @transform_4, window_bounds = array<i64: 8, 1>}, {pipeline_mode = #tpu.pipeline_mode<synchronous>, transform_indices = @transform_5, window_bounds = array<i64: 2, 1>}, {pipeline_mode = #tpu.pipeline_mode<synchronous>, transform_indices = @transform_6, window_bounds = array<i64: 2, 1>}, {transform_indices = @transform_7, window_bounds = array<i64: 1, 12, 256>}]} {
    %c0 = arith.constant 0 : index
    %c0_0 = arith.constant 0 : index
    %c0_1 = arith.constant 0 : index
    %0 = vector.load %arg1[%c0, %c0_0, %c0_1] : memref<1x4x256xf32, #tpu.memory_space<vmem>>, vector<1x4x256xf32>
    %1 = vector.shape_cast %0 : vector<1x4x256xf32> to vector<4x256xf32>
    %c0_2 = arith.constant 0 : index
    %c0_3 = arith.constant 0 : index
    %2 = vector.load %arg2[%c0_2, %c0_3] : memref<24x4xf32, #tpu.memory_space<vmem>>, vector<24x4xf32>
    %cst = arith.constant dense<0.000000e+00> : vector<24x256xf32>
    %3 = tpu.matmul %2, %1, %cst {dimension_numbers = #tpu.dot_dimension_numbers<[1], [0], [0], [1], [0, 0, 1, 1], [], []>} : vector<24x4xf32>, vector<4x256xf32>, vector<24x256xf32> -> vector<24x256xf32>
    %c0_4 = arith.constant 0 : index
    %c0_5 = arith.constant 0 : index
    %4 = vector.load %arg3[%c0_4, %c0_5] : memref<24x1xf32, #tpu.memory_space<vmem>>, vector<24x1xf32>
    %5 = vector.broadcast %4 : vector<24x1xf32> to vector<24x256xf32>
    %6 = arith.addf %3, %5 : vector<24x256xf32>
    %cst_6 = arith.constant 0.000000e+00 : f32
    %7 = vector.broadcast %cst_6 : f32 to vector<10x128xf32>
    %c0_7 = arith.constant 0 : index
    %c0_8 = arith.constant 0 : index
    %8 = vector.load %arg9[%c0_7, %c0_8] : memref<10x448xf32, #tpu.memory_space<vmem>>, vector<10x128xf32>
    tpu.vector_store %arg9[%c0_7, %c0_8], %7 {strides = array<i32>} : memref<10x448xf32, #tpu.memory_space<vmem>>, vector<10x128xf32>,
    %cst_9 = arith.constant 0.000000e+00 : f32
    %9 = vector.broadcast %cst_9 : f32 to vector<10x64xf32>
    %c0_10 = arith.constant 0 : index
    %c384 = arith.constant 384 : index
    %10 = vector.load %arg9[%c0_10, %c384] : memref<10x448xf32, #tpu.memory_space<vmem>>, vector<10x64xf32>
    tpu.vector_store %arg9[%c0_10, %c384], %9 {strides = array<i32>} : memref<10x448xf32, #tpu.memory_space<vmem>>, vector<10x64xf32>,
    %11 = vector.extract_strided_slice %6 {offsets = [0, 0], sizes = [10, 256], strides = [1, 1]} : vector<24x256xf32> to vector<10x256xf32>
    %cst_11 = arith.constant 0.000000e+00 : f32
    %12 = vector.broadcast %cst_11 : f32 to vector<10x256xf32>
    %13 = arith.maximumf %11, %12 : vector<10x256xf32>
    %c0_12 = arith.constant 0 : index
    %c128 = arith.constant 128 : index
    %14 = vector.load %arg9[%c0_12, %c128] : memref<10x448xf32, #tpu.memory_space<vmem>>, vector<10x256xf32>
    tpu.vector_store %arg9[%c0_12, %c128], %13 {strides = array<i32>} : memref<10x448xf32, #tpu.memory_space<vmem>>, vector<10x256xf32>,
    %c0_13 = arith.constant 0 : index
    %c112 = arith.constant 112 : index
    %15 = vector.load %arg9[%c0_13, %c112] : memref<10x448xf32, #tpu.memory_space<vmem>>, vector<2x256xf32>
    %c0_14 = arith.constant 0 : index
    %c128_15 = arith.constant 128 : index
    %16 = vector.load %arg9[%c0_14, %c128_15] : memref<10x448xf32, #tpu.memory_space<vmem>>, vector<2x256xf32>
    %c0_16 = arith.constant 0 : index
    %c144 = arith.constant 144 : index
    %17 = vector.load %arg9[%c0_16, %c144] : memref<10x448xf32, #tpu.memory_space<vmem>>, vector<2x256xf32>
    %c2 = arith.constant 2 : index
    %c96 = arith.constant 96 : index
    %18 = vector.load %arg9[%c2, %c96] : memref<10x448xf32, #tpu.memory_space<vmem>>, vector<2x256xf32>
    %c2_17 = arith.constant 2 : index
    %c128_18 = arith.constant 128 : index
    %19 = vector.load %arg9[%c2_17, %c128_18] : memref<10x448xf32, #tpu.memory_space<vmem>>, vector<2x256xf32>
    %c2_19 = arith.constant 2 : index
    %c160 = arith.constant 160 : index
    %20 = vector.load %arg9[%c2_19, %c160] : memref<10x448xf32, #tpu.memory_space<vmem>>, vector<2x256xf32>
    %c4 = arith.constant 4 : index
    %c80 = arith.constant 80 : index
    %21 = vector.load %arg9[%c4, %c80] : memref<10x448xf32, #tpu.memory_space<vmem>>, vector<2x256xf32>
    %c4_20 = arith.constant 4 : index
    %c128_21 = arith.constant 128 : index
    %22 = vector.load %arg9[%c4_20, %c128_21] : memref<10x448xf32, #tpu.memory_space<vmem>>, vector<2x256xf32>
    %c4_22 = arith.constant 4 : index
    %c176 = arith.constant 176 : index
    %23 = vector.load %arg9[%c4_22, %c176] : memref<10x448xf32, #tpu.memory_space<vmem>>, vector<2x256xf32>
    %c6 = arith.constant 6 : index
    %c64 = arith.constant 64 : index
    %24 = vector.load %arg9[%c6, %c64] : memref<10x448xf32, #tpu.memory_space<vmem>>, vector<2x256xf32>
    %c6_23 = arith.constant 6 : index
    %c128_24 = arith.constant 128 : index
    %25 = vector.load %arg9[%c6_23, %c128_24] : memref<10x448xf32, #tpu.memory_space<vmem>>, vector<2x256xf32>
    %c6_25 = arith.constant 6 : index
    %c192 = arith.constant 192 : index
    %26 = vector.load %arg9[%c6_25, %c192] : memref<10x448xf32, #tpu.memory_space<vmem>>, vector<2x256xf32>
    %27 = tpu.concatenate %15, %16, %17, %18, %19, %20, %21, %22, %23, %24, %25, %26 in 0 : vector<2x256xf32>, vector<2x256xf32>, vector<2x256xf32>, vector<2x256xf32>, vector<2x256xf32>, vector<2x256xf32>, vector<2x256xf32>, vector<2x256xf32>, vector<2x256xf32>, vector<2x256xf32>, vector<2x256xf32>, vector<2x256xf32> -> vector<24x256xf32>
    %c0_26 = arith.constant 0 : index
    %c0_27 = arith.constant 0 : index
    %28 = vector.load %arg4[%c0_26, %c0_27] : memref<8x24xf32, #tpu.memory_space<vmem>>, vector<8x24xf32>
    %cst_28 = arith.constant dense<0.000000e+00> : vector<8x256xf32>
    %29 = tpu.matmul %28, %27, %cst_28 {dimension_numbers = #tpu.dot_dimension_numbers<[1], [0], [0], [1], [0, 0, 1, 1], [], []>} : vector<8x24xf32>, vector<24x256xf32>, vector<8x256xf32> -> vector<8x256xf32>
    %c0_29 = arith.constant 0 : index
    %c0_30 = arith.constant 0 : index
    %30 = vector.load %arg5[%c0_29, %c0_30] : memref<8x1xf32, #tpu.memory_space<vmem>>, vector<8x1xf32>
    %31 = vector.broadcast %30 : vector<8x1xf32> to vector<8x256xf32>
    %32 = arith.addf %29, %31 : vector<8x256xf32>
    %c8 = arith.constant 8 : index
    %c112_31 = arith.constant 112 : index
    %33 = vector.load %arg9[%c8, %c112_31] : memref<10x448xf32, #tpu.memory_space<vmem>>, vector<2x256xf32>
    %c8_32 = arith.constant 8 : index
    %c128_33 = arith.constant 128 : index
    %34 = vector.load %arg9[%c8_32, %c128_33] : memref<10x448xf32, #tpu.memory_space<vmem>>, vector<2x256xf32>
    %35 = arith.maximumf %33, %34 : vector<2x256xf32>
    %c8_34 = arith.constant 8 : index
    %c144_35 = arith.constant 144 : index
    %36 = vector.load %arg9[%c8_34, %c144_35] : memref<10x448xf32, #tpu.memory_space<vmem>>, vector<2x256xf32>
    %37 = arith.maximumf %35, %36 : vector<2x256xf32>
    %c0_36 = arith.constant 0 : index
    %c0_37 = arith.constant 0 : index
    %38 = vector.load %arg6[%c0_36, %c0_37] : memref<2x1xf32, #tpu.memory_space<vmem>>, vector<2x1xf32>
    %39 = vector.broadcast %38 : vector<2x1xf32> to vector<2x256xf32>
    %40 = arith.mulf %37, %39 : vector<2x256xf32>
    %c0_38 = arith.constant 0 : index
    %c0_39 = arith.constant 0 : index
    %41 = vector.load %arg7[%c0_38, %c0_39] : memref<2x1xf32, #tpu.memory_space<vmem>>, vector<2x1xf32>
    %42 = vector.broadcast %41 : vector<2x1xf32> to vector<2x256xf32>
    %43 = arith.addf %40, %42 : vector<2x256xf32>
    %44 = vector.extract_strided_slice %6 {offsets = [10, 0], sizes = [2, 256], strides = [1, 1]} : vector<24x256xf32> to vector<2x256xf32>
    %45 = tpu.concatenate %32, %43, %44 in 0 : vector<8x256xf32>, vector<2x256xf32>, vector<2x256xf32> -> vector<12x256xf32>
    %46 = vector.extract_strided_slice %6 {offsets = [12, 0], sizes = [12, 256], strides = [1, 1]} : vector<24x256xf32> to vector<12x256xf32>
    %47 = arith.addf %45, %46 : vector<12x256xf32>
    %48 = vector.shape_cast %47 : vector<12x256xf32> to vector<1x12x256xf32>
    %c0_40 = arith.constant 0 : index
    %c0_41 = arith.constant 0 : index
    %c0_42 = arith.constant 0 : index
    %49 = vector.load %arg8[%c0_40, %c0_41, %c0_42] : memref<1x12x256xf32, #tpu.memory_space<vmem>>, vector<1x12x256xf32>
    tpu.vector_store %arg8[%c0_40, %c0_41, %c0_42], %48 {strides = array<i32>} : memref<1x12x256xf32, #tpu.memory_space<vmem>>, vector<1x12x256xf32>,
    return
  }
  func.func @transform_0(%arg0: i32) -> (i32, i32, i32) {
    %c0_i32 = arith.constant 0 : i32
    %c0_i32_0 = arith.constant 0 : i32
    %c0_i32_1 = arith.constant 0 : i32
    return %arg0, %c0_i32, %c0_i32_0 : i32, i32, i32
  }
  func.func @transform_1(%arg0: i32) -> (i32, i32) {
    %c0_i32 = arith.constant 0 : i32
    %c0_i32_0 = arith.constant 0 : i32
    %c0_i32_1 = arith.constant 0 : i32
    return %c0_i32, %c0_i32_0 : i32, i32
  }
  func.func @transform_2(%arg0: i32) -> (i32, i32) {
    %c0_i32 = arith.constant 0 : i32
    %c0_i32_0 = arith.constant 0 : i32
    %c0_i32_1 = arith.constant 0 : i32
    return %c0_i32, %c0_i32_0 : i32, i32
  }
  func.func @transform_3(%arg0: i32) -> (i32, i32) {
    %c0_i32 = arith.constant 0 : i32
    %c0_i32_0 = arith.constant 0 : i32
    %c0_i32_1 = arith.constant 0 : i32
    return %c0_i32, %c0_i32_0 : i32, i32
  }
  func.func @transform_4(%arg0: i32) -> (i32, i32) {
    %c0_i32 = arith.constant 0 : i32
    %c0_i32_0 = arith.constant 0 : i32
    %c0_i32_1 = arith.constant 0 : i32
    return %c0_i32, %c0_i32_0 : i32, i32
  }
  func.func @transform_5(%arg0: i32) -> (i32, i32) {
    %c0_i32 = arith.constant 0 : i32
    %c0_i32_0 = arith.constant 0 : i32
    %c0_i32_1 = arith.constant 0 : i32
    return %c0_i32, %c0_i32_0 : i32, i32
  }
  func.func @transform_6(%arg0: i32) -> (i32, i32) {
    %c0_i32 = arith.constant 0 : i32
    %c0_i32_0 = arith.constant 0 : i32
    %c0_i32_1 = arith.constant 0 : i32
    return %c0_i32, %c0_i32_0 : i32, i32
  }
  func.func @transform_7(%arg0: i32) -> (i32, i32, i32) {
    %c0_i32 = arith.constant 0 : i32
    %c0_i32_0 = arith.constant 0 : i32
    %c0_i32_1 = arith.constant 0 : i32
    return %arg0, %c0_i32, %c0_i32_0 : i32, i32, i32
  }
}

</mosaic_0001>

<bundles_post_ra>
// kernel: _lambda_.1
= control target key start
LH: loop header
LB: loop body
LE: loop exit
PB: predicated region body
PF: predicated region fallthrough
CT: control target
= control target key end

     0   :  { %s993_s24 = smov 0   ;;  %s1163_s0 = inlined_call_operand.vmem [shape: f32[2,4,256], index: 0, kind: input, shape index: {}]   ;;  %s1164_s1 = inlined_call_operand.vmem [shape: f32[24,4], index: 1, kind: input, shape index: {}]   ;;  %s1165_s2 = inlined_call_operand.vmem [shape: f32[24,1], index: 2, kind: input, shape index: {}]   ;;  %s1166_s3 = inlined_call_operand.vmem [shape: f32[8,24], index: 3, kind: input, shape index: {}]   ;;  %s1167_s4 = inlined_call_operand.vmem [shape: f32[8,1], index: 4, kind: input, shape index: {}]   ;;  %s1168_s5 = inlined_call_operand.vmem [shape: f32[2,1], index: 5, kind: input, shape index: {}]   ;;  %s1169_s6 = inlined_call_operand.vmem [shape: f32[2,1], index: 6, kind: input, shape index: {}]   ;;  %s1170_s7 = inlined_call_operand.vmem [shape: f32[2,12,256], index: 7, kind: output, shape index: {}]  }
   0x1 LB: > { %s813_s25 = sadd.s32 4294967295, %s942_s24   ;;  %p817_p0 = scmp.ge.s32.totalorder %s942_s24, 1  ;;  %s942_s24 = sphi %s993_s24, %s17_s24  }
   0x2   : > { %p237_p1 = scmp.lt.s32.totalorder %s942_s24, 3 }
   0x4   : > { %p238_p2 = pnand %p817_p0, %p237_p1 }
   0x5   : > { %p269_p3 = scmp.lt.s32.totalorder (!%p238_p2), %s813_s25, 1  ;;  %s946_s11 = smov (!%p238_p2), 80  }
   0x6   : > { %241 = sbr.rel (%p238_p2) target bundleno = 676 (0x2a4), region = 48  ;;  %s947_s12 = smov (!%p238_p2), 64  }
   0x7   : > { %s948_s13 = smov (!%p238_p2), 32   ;;  %s949_s14 = smov (!%p238_p2), 48  }
   0x8   : > { %s950_s15 = smov (!%p238_p2), 112   ;;  %s951_s16 = smov (!%p238_p2), 96  }
   0x9   : > { %s952_s17 = smov (!%p238_p2), 16  }
   0xb   : > { %v283_v0 = vld [vmem:[%s1165_s2] sm:$0xff]  ;;  %v944_v1 = vmov 0   ;;  %s1172_s25 = smov (!%p269_p3, %s813_s25), 1  ;;  %vm315_vm0 = vcmask 1043456   ;;  %vm305_vm1 = vcmask 31744   ;;  %vm374_vm2 = vcmask 523264  }
   0xc   : > { %853 = vset.pattern.permute.xlu0 %v944_v1  ;;  %934 = vset.pattern.permute.xlu2 %v944_v1  ;;  %s834_s28 = sshll.u32 %s1172_s25, 3  ;;  %v280_v3 = vld [vmem:[%s1164_s1] sm:$0xff]  ;;  %v945_v6 = vmov 0.0   ;;  %v281_v61 = vld [vmem:[%s1164_s1 + $0x8] sm:$0xff]  ;;  %vm410_vm3 = vcmask 916480   ;;  %vm524_vm4 = vcmask 392192  }
   0xd   : > { %288 = vperm.xlu0 %853, %v283_v0   ;;  %935 = vset.pattern.permute.xlu1 %v944_v1  ;;  %s273_s8 = scalar_lea.vmem %s1163_s0, %s834_s28  ;;  %375 = vst.msk [vmem:[#allocation2 + $0x18] sm:$0xff] %vm374_vm2, %v945_v6  ;;  %vm466_vm5 = vcmask 654336   ;;  %vm481_vm6 = vcmask 261120   ;;  %vm552_vm7 = vcmask 1041408   ;;  %vm559_vm8 = vcmask 1045504  }
   0xe   : > { %v279_v2 = vld [vmem:[%s273_s8] sm:$0xff]  ;;  %372 = vst [vmem:[#allocation2] sm:$0xff] %v945_v6  ;;  %vm425_vm9 = vcmask 785408   ;;  %vm443_vm10 = vcmask 130048   ;;  %vm376_vm11 = vcmask 517120   ;;  %vm627_vm12 = vcmask 195584  }
   0xf   : > { %302 = vst [vmem:[#allocation1] ss:$2 sm:$0xff] %v279_v2 }
  0x10   : > { %373 = vst [vmem:[#allocation2 + $0x20] sm:$0x3] %v945_v6 }
  0x11   : > { %377 = vst.msk [vmem:[#allocation2 + $0x38] sm:$0x3] %vm376_vm11, %v945_v6 }
  0x14   : > { %v393_v7 = vld [vmem:[#allocation2 + $0x18] sm:$0xc]  ;;  %v397_v8 = vld [vmem:[#allocation2 + $0x18] sm:$0x30]  ;;  %v401_v17 = vld [vmem:[#allocation2 + $0x18] sm:$0xc0] }
  0x15   : > { %464 = vrot.lane.b32.xlu2 %v393_v7, %s946_s11  ;;  %v500_v9 = vrot.slane %v397_v8, 4  ;;  %v394_v29 = vld [vmem:[#allocation2] sm:$0x30]  ;;  %v398_v33 = vld [vmem:[#allocation2] sm:$0xc0] }
  0x16   : > { %v303_v4 = vld.sshfl [vmem:[#allocation1] sm:$0xff pattern:$0x75316420]  ;;  %v304_v5 = vld.sshfl [vmem:[#allocation1 + $0x8] sm:$0xff pattern:$0x75316420] }
  0x17   : > { %822 = vmatpush.msk.msra.mxu0 %vm315_vm0, %v303_v4  ;;  %826 = vmatpush.msk.msra.mxu1 %vm315_vm0, %v304_v5  ;;  %v515_v36 = vrot.slane %v398_v33, 4  ;;  %v390_v54 = vld [vmem:[#allocation2] sm:$0xc]  ;;  %v389_v55 = vld [vmem:[#allocation2 + $0x18] sm:$0x3] }
  0x18   : > { %823 = vmatmul.msk.f32.vlgmr.msra.gmra.mxu0 %vm305_vm1, %v280_v3  ;;  %827 = vmatmul.msk.f32.vlgmr.msra.gmra.mxu1 %vm305_vm1, %v280_v3  ;;  %v434_v56 = vrot.slane %v390_v54, 4  ;;  %v418_v59 = vrot.slane %v389_v55, 4 }
  0x19   : > { %505 = vrot.lane.b32.xlu1 %v500_v9, %s947_s12 }
  0x20   : > { %824 = vmatmul.msk.f32.gmra.mxu0 %vm305_vm1, %v281_v61  ;;  %828 = vmatmul.msk.f32.gmra.mxu1 %vm305_vm1, %v281_v61 }
  0x6f   : > { %v465_v62 = vpop.permute.xlu2 %464 }
  0x7f   : > { %v289_v10 = vpop.permute.xlu0 %288 }
  0x8b   : > { %v506_v0 = vpop.permute.xlu1 %505 }
  0x95   : > { %v337_v11 = vpop.f32.mrf.mxu0  ;;  %v363_v12 = vpop.f32.mrf.mxu1 }
  0x96   : > { %v338_v13 = vadd.f32 %v337_v11, %v289_v10  ;;  %v364_v14 = vadd.f32 %v363_v12, %v289_v10 }
  0x98   : > { %v378_v15 = vmax.f32 %v338_v13, 0.0  ;;  %v379_v16 = vmax.f32 %v364_v14, 0.0 }
  0x9a   : > { %382 = vst [vmem:[#allocation2 + $0x8] sm:$0xff] %v378_v15 }
  0x9b   : > { %383 = vst [vmem:[#allocation2 + $0x10] sm:$0xff] %v379_v16 }
  0xa1   : > { %v391_v18 = vld [vmem:[#allocation2 + $0x8] sm:$0xc]  ;;  %v395_v24 = vld [vmem:[#allocation2 + $0x8] sm:$0x30]  ;;  %v399_v28 = vld [vmem:[#allocation2 + $0x8] sm:$0xc0] }
  0xa2   : > { %v396_v19 = vld [vmem:[#allocation2 + $0x10] sm:$0x30]  ;;  %v400_v20 = vld [vmem:[#allocation2 + $0x10] sm:$0xc0]  ;;  %v392_v21 = vld [vmem:[#allocation2 + $0x10] sm:$0xc]  ;;  %v864_v32 = vpack.i.bf16 %v395_v24, %v394_v29 }
  0xa3   : > { %479 = vrot.lane.b32.xlu2 %v396_v19, %s948_s13  ;;  %v859_v22 = vpack.i.bf16 %v401_v17, %v400_v20  ;;  %v854_v23 = vpack.i.bf16 %v392_v21, %v391_v18  ;;  %v517_v25 = vrot.slane %v400_v20, 4  ;;  %v499_v26 = vrot.slane %v396_v19, 4  ;;  %v1023_v41 = vld [vmem:[#allocation2 + $0x8] sm:$0x3]  ;;  %v1025_v42 = vld [vmem:[#allocation2 + $0x10] sm:$0x3] }
  0xa4   : > { %v498_v27 = vrot.slane %v395_v24, 4  ;;  %v530_v34 = vrot.slane %v399_v28, 2  ;;  %v531_v35 = vrot.slane %v400_v20, 2  ;;  %v516_v37 = vrot.slane %v399_v28, 4 }
  0xa5   : > { %860 = vrot.lane.b32.xlu0 %v859_v22, %s949_s14  ;;  %855 = vrot.lane.b32.xlu1 %v854_v23, %s946_s11  ;;  %v879_v30 = vpack.i.bf16 %v399_v28, %v517_v25  ;;  %v449_v38 = vrot.slane %v391_v18, 2  ;;  %v450_v39 = vrot.slane %v392_v21, 2  ;;  %v416_v45 = vrot.slane %v1023_v41, 4 }
  0xa6   : > { %v869_v31 = vpack.i.bf16 %v499_v26, %v498_v27  ;;  %v884_v40 = vpack.i.bf16 %v531_v35, %v530_v34  ;;  %v874_v43 = vpack.i.bf16 %v516_v37, %v515_v36  ;;  %v417_v46 = vrot.slane %v1025_v42, 4 }
  0xa7   : > { %v889_v44 = vpack.i.bf16 %v450_v39, %v449_v38  ;;  %v488_v47 = vrot.slane %v396_v19, 6  ;;  %v487_v48 = vrot.slane %v395_v24, 6  ;;  %v404_v49 = vrot.slane %v1023_v41, 6 }
  0xa8   : > { %v405_v50 = vrot.slane %v1025_v42, 6  ;;  %v904_v51 = vpack.i.bf16 %v417_v46, %v416_v45  ;;  %v435_v57 = vrot.slane %v391_v18, 4  ;;  %v436_v58 = vrot.slane %v392_v21, 4 }
  0xa9   : > { %v899_v52 = vpack.i.bf16 %v488_v47, %v487_v48 }
  0xaa   : > { %v894_v53 = vpack.i.bf16 %v405_v50, %v404_v49  ;;  %v909_v60 = vpack.i.bf16 %v435_v57, %v434_v56 }
  0xab   : > { %880 = vrot.lane.b32.xlu2 %v879_v30, %s949_s14 }
  0xad   : > { %870 = vrot.lane.b32.xlu0 %v869_v31, %s947_s12  ;;  %865 = vrot.lane.b32.xlu1 %v864_v32, %s948_s13  ;;  %s835_s13 = sshll.u32 %s1172_s25, 5 }
  0xb3   : > { %885 = vrot.lane.b32.xlu2 %v884_v40, %s950_s15 }
  0xb5   : > { %875 = vrot.lane.b32.xlu1 %v874_v43, %s949_s14  ;;  %890 = vrot.lane.b32.xlu0 %v889_v44, %s950_s15 }
  0xbb   : > { %905 = vrot.lane.b32.xlu2 %v904_v51, %s951_s16 }
  0xbd   : > { %900 = vrot.lane.b32.xlu1 %v899_v52, %s950_s15  ;;  %895 = vrot.lane.b32.xlu0 %v894_v53, %s950_s15 }
  0xc3   : > { %441 = vrot.lane.b32.xlu2 %v436_v58, %s952_s17 }
  0xc5   : > { %910 = vrot.lane.b32.xlu1 %v909_v60, %s952_s17  ;;  %423 = vrot.lane.b32.xlu0 %v418_v59, %s951_s16 }
  0xfd   : > { %v1044_v63 = vpop.permute.xlu2 %479 }
 0x105   : > { %v881_v1 = vpop.permute.xlu2 %880 }
 0x106   : > { %v883_v12 = vunpack.i.h.bf16 %v881_v1  ;;  %v882_v13 = vunpack.i.l.bf16 %v881_v1 }
 0x10d   : > { %v886_v7 = vpop.permute.xlu2 %885 }
 0x10e   : > { %v888_v8 = vunpack.i.h.bf16 %v886_v7  ;;  %v887_v9 = vunpack.i.l.bf16 %v886_v7 }
 0x110   : > { %v536_v14 = vsel %vm410_vm3, %v887_v9, %v888_v8 }
 0x115   : > { %v906_v43 = vpop.permute.xlu2 %905 }
 0x117   : > { %v861_v2 = vpop.permute.xlu0 %860  ;;  %v856_v3 = vpop.permute.xlu1 %855 }
 0x118   : > { %v862_v15 = vunpack.i.l.bf16 %v861_v2  ;;  %v858_v22 = vunpack.i.h.bf16 %v856_v3  ;;  %v857_v23 = vunpack.i.l.bf16 %v856_v3  ;;  %v863_v37 = vunpack.i.h.bf16 %v861_v2  ;;  %v386_v2 = vld [vmem:[#allocation2] sm:$0x3] }
 0x11a   : > { %v547_v33 = vsel %vm524_vm4, %v883_v12, %v862_v15  ;;  %v467_v38 = vsel %vm466_vm5, %v857_v23, %v858_v22  ;;  %v468_v44 = vsel %vm466_vm5, %v858_v22, %v465_v62  ;;  %v548_v57 = vsel %vm524_vm4, %v862_v15, %v863_v37 }
 0x11f   : > { %v871_v4 = vpop.permute.xlu0 %870  ;;  %v866_v5 = vpop.permute.xlu1 %865 }
 0x120   : > { %v873_v10 = vunpack.i.h.bf16 %v871_v4  ;;  %v872_v11 = vunpack.i.l.bf16 %v871_v4  ;;  %v868_v24 = vunpack.i.h.bf16 %v866_v5  ;;  %v867_v30 = vunpack.i.l.bf16 %v866_v5 }
 0x122   : > { %v507_v25 = vsel %vm374_vm2, %v872_v11, %v873_v10  ;;  %v508_v29 = vsel %vm374_vm2, %v873_v10, %v506_v0  ;;  %v482_v48 = vsel %vm481_vm6, %v867_v30, %v868_v24  ;;  %v483_v58 = vsel %vm481_vm6, %v868_v24, %v1044_v63 }
 0x127   : > { %v876_v16 = vpop.permute.xlu1 %875  ;;  %v891_v17 = vpop.permute.xlu0 %890 }
 0x128   : > { %v878_v18 = vunpack.i.h.bf16 %v876_v16  ;;  %v877_v19 = vunpack.i.l.bf16 %v876_v16  ;;  %v893_v20 = vunpack.i.h.bf16 %v891_v17  ;;  %v892_v21 = vunpack.i.l.bf16 %v891_v17 }
 0x12a   : > { %v526_v26 = vsel %vm524_vm4, %v878_v18, %v882_v13  ;;  %v525_v27 = vsel %vm524_vm4, %v877_v19, %v878_v18  ;;  %v572_v28 = vsel %vm552_vm7, %v872_v11, %v877_v19  ;;  %v455_v32 = vsel %vm410_vm3, %v892_v21, %v893_v20  ;;  %v442_v18 = vpop.permute.xlu2 %441 }
 0x12b   : > { %v573_v31 = vsel %vm552_vm7, %v507_v25, %v525_v27  ;;  %v574_v34 = vsel %vm552_vm7, %v508_v29, %v526_v26  ;;  %v575_v35 = vsel %vm315_vm0, %v572_v28, %v887_v9  ;;  %v563_v45 = vsel %vm552_vm7, %v892_v21, %v857_v23  ;;  %v282_v28 = vld [vmem:[%s1164_s1 + $0x10] sm:$0xff] }
 0x12c   : > { %v576_v36 = vsel %vm315_vm0, %v573_v31, %v536_v14  ;;  %v578_v39 = vsel %vm559_vm8, %v575_v35, %v883_v12  ;;  %v564_v46 = vsel %vm552_vm7, %v455_v32, %v467_v38  ;;  %v565_v49 = vsel %vm552_vm7, %v893_v20, %v468_v44  ;;  %825 = vmatmul.msk.f32.gmra.mxu0 %vm305_vm1, %v282_v28  ;;  %v366_v31 = vpop.f32.mrf.mxu1 }
 0x12d   : > { %v579_v40 = vsel %vm559_vm8, %v576_v36, %v547_v33  ;;  %v577_v52 = vsel %vm315_vm0, %v574_v34, %v888_v8  ;;  %v566_v59 = vsel %vm315_vm0, %v563_v45, %v867_v30  ;;  %v567_v60 = vsel %vm315_vm0, %v564_v46, %v482_v48  ;;  %829 = vmatmul.msk.f32.gmra.mxu1 %vm305_vm1, %v282_v28  ;;  %v340_v30 = vpop.f32.mrf.mxu0 }
 0x12e   : > { %v914_v47 = vpack.i.bf16 %v579_v40, %v578_v39  ;;  %v580_v0 = vsel %vm559_vm8, %v577_v52, %v548_v57  ;;  %v568_v1 = vsel %vm315_vm0, %v565_v49, %v483_v58  ;;  %v908_v8 = vunpack.i.h.bf16 %v906_v43  ;;  %v687_v52 = vld [vmem:[#allocation2 + $0x38] sm:$0x3] }
 0x12f   : > { %v901_v50 = vpop.permute.xlu1 %900  ;;  %v896_v51 = vpop.permute.xlu0 %895  ;;  %v907_v9 = vunpack.i.l.bf16 %v906_v43  ;;  %v582_v58 = vld [vmem:[%s1167_s4] sm:$0xff] }
 0x130   : > { %v903_v53 = vunpack.i.h.bf16 %v901_v50  ;;  %v902_v54 = vunpack.i.l.bf16 %v901_v50  ;;  %v898_v55 = vunpack.i.h.bf16 %v896_v51  ;;  %v897_v56 = vunpack.i.l.bf16 %v896_v51  ;;  %915 = vrot.lane.b32.xlu0 %v914_v47, %s952_s17  ;;  %v703_v51 = vld [vmem:[%s1168_s5] sm:$0x3] }
 0x131   : > { %v426_v20 = vsel %vm425_vm9, %v907_v9, %v908_v8 }
 0x132   : > { %v493_v61 = vsel %vm410_vm3, %v902_v54, %v903_v53  ;;  %v569_v62 = vsel %vm559_vm8, %v566_v59, %v902_v54  ;;  %v571_v5 = vsel %vm559_vm8, %v568_v1, %v903_v53  ;;  %v411_v63 = vsel %vm410_vm3, %v897_v56, %v898_v55  ;;  %v581_v59 = vld [vmem:[%s1166_s3] sm:$0xff] }
 0x133   : > { %v919_v3 = vpack.i.bf16 %v569_v62, %v580_v0  ;;  %v570_v4 = vsel %vm559_vm8, %v567_v60, %v493_v61  ;;  %v553_v10 = vsel %vm552_vm7, %v386_v2, %v897_v56  ;;  %v554_v11 = vsel %vm552_vm7, %v1023_v41, %v411_v63  ;;  %v285_v62 = vld [vmem:[%s1165_s2 + $0x10] sm:$0xff]  ;;  %v712_v0 = vld [vmem:[%s1169_s6] sm:$0x3] }
 0x134   : > { %v924_v7 = vpack.i.bf16 %v571_v5, %v570_v4  ;;  %v555_v17 = vsel %vm552_vm7, %v1025_v42, %v898_v55  ;;  %v556_v21 = vsel %vm315_vm0, %v553_v10, %v907_v9  ;;  %v557_v23 = vsel %vm315_vm0, %v554_v11, %v426_v20  ;;  %v284_v42 = vld [vmem:[%s1165_s2 + $0x8] sm:$0xff] }
 0x135   : > { %920 = vrot.lane.b32.xlu1 %v919_v3, %s952_s17  ;;  %v671_v4 = vld [vmem:[#allocation2 + $0x20] sm:$0x3] }
 0x136   : > { %925 = vrot.lane.b32.xlu2 %v924_v7, %s952_s17 }
 0x137   : > { %v911_v12 = vpop.permute.xlu1 %910  ;;  %v424_v13 = vpop.permute.xlu0 %423 }
 0x138   : > { %v913_v14 = vunpack.i.h.bf16 %v911_v12  ;;  %v912_v15 = vunpack.i.l.bf16 %v911_v12  ;;  %v427_v16 = vsel %vm425_vm9, %v908_v8, %v424_v13 }
 0x139   : > { %v558_v19 = vsel %vm315_vm0, %v555_v17, %v427_v16 }
 0x13a   : > { %v444_v22 = vsel %vm443_vm10, %v912_v15, %v913_v14  ;;  %v445_v41 = vsel %vm443_vm10, %v913_v14, %v442_v18  ;;  %v560_v24 = vsel %vm559_vm8, %v556_v21, %v912_v15 }
 0x13b   : > { %v562_v25 = vsel %vm559_vm8, %v558_v19, %v445_v41  ;;  %v561_v26 = vsel %vm559_vm8, %v557_v23, %v444_v22 }
 0x13c   : > { %v929_v27 = vpack.i.bf16 %v561_v26, %v560_v24 }
 0x13d   : > { %601 = vrot.lane.b32.xlu1 %v562_v25, %s952_s17 }
 0x13e   : > { %293 = vperm.xlu2 %934, %v284_v42   ;;  %930 = vrot.lane.b32.xlu0 %v929_v27, %s952_s17 }
 0x190   : > { %v926_v29 = vpop.permute.xlu2 %925 }
 0x191   : > { %v928_v45 = vunpack.i.h.bf16 %v926_v29  ;;  %v927_v46 = vunpack.i.l.bf16 %v926_v29 }
 0x193   : > { %v618_v53 = vsel %vm443_vm10, %v927_v46, %v928_v45 }
 0x198   : > { %v294_v32 = vpop.permute.xlu2 %293 }
 0x199   : > { %v1108_v33 = vadd.f32 %v340_v30, %v294_v32  ;;  %v1110_v34 = vadd.f32 %v366_v31, %v294_v32 }
 0x19b   : > { %v380_v35 = vmax.f32 %v1108_v33, 0.0  ;;  %v381_v36 = vmax.f32 %v1110_v34, 0.0  ;;  %v740_v28 = vrot.slane %v1108_v33, 4 }
 0x19d   : > { %384 = vst [vmem:[#allocation2 + $0x28] sm:$0x3] %v380_v35  ;;  %v743_v35 = vrot.slane %v1110_v34, 4 }
 0x19e   : > { %385 = vst [vmem:[#allocation2 + $0x30] sm:$0x3] %v381_v36 }
 0x1a2   : > { %v916_v37 = vpop.permute.xlu0 %915 }
 0x1a3   : > { %v918_v38 = vunpack.i.h.bf16 %v916_v37  ;;  %v917_v39 = vunpack.i.l.bf16 %v916_v37 }
 0x1a4   : > { %v672_v40 = vld [vmem:[#allocation2 + $0x28] sm:$0x3] }
 0x1a5   : > { %689 = vrot.lane.b32.xlu2 %v672_v40, %s951_s16  ;;  %v673_v6 = vld [vmem:[#allocation2 + $0x30] sm:$0x3]  ;;  %676 = vrot.lane.b32.xlu0 %v672_v40, %s950_s15  ;;  %v619_v43 = vsel %vm443_vm10, %v917_v39, %v918_v38 }
 0x1a6   : > { %678 = vrot.lane.b32.xlu1 %v673_v6, %s950_s15  ;;  %644 = vmatpush.msra.mxu2 %v619_v43 }
 0x1a7   : > { %v921_v44 = vpop.permute.xlu1 %920 }
 0x1a8   : > { %v923_v47 = vunpack.i.h.bf16 %v921_v44  ;;  %v922_v48 = vunpack.i.l.bf16 %v921_v44 }
 0x1a9   : > { %v343_v23 = vpop.f32.mrf.mxu0 }
 0x1aa   : > { %v617_v49 = vsel %vm443_vm10, %v923_v47, %v927_v46  ;;  %v620_v50 = vsel %vm443_vm10, %v918_v38, %v922_v48  ;;  %v369_v25 = vpop.f32.mrf.mxu1 }
 0x1ab   : > { %645 = vmatpush.msra.mxu2 %v617_v49  ;;  %664 = vmatpush.msra.mxu3 %v620_v50 }
 0x1ad   : > { %706 = vperm.xlu2 %934, %v703_v51   ;;  %665 = vmatpush.msra.mxu3 %v618_v53 }
 0x1ae   : > { %693 = vrot.lane.b32.xlu1 %v687_v52, %s951_s16  ;;  %691 = vrot.lane.b32.xlu0 %v673_v6, %s951_s16  ;;  %s278_s16 = scalar_lea.vmem %s1170_s7, %s835_s13 }
 0x1af   : > { %v602_v57 = vpop.permute.xlu1 %601 }
 0x1b0   : > { %v931_v54 = vpop.permute.xlu0 %930 }
 0x1b1   : > { %v933_v55 = vunpack.i.h.bf16 %v931_v54  ;;  %v932_v56 = vunpack.i.l.bf16 %v931_v54 }
 0x1b3   : > { %v615_v60 = vsel %vm443_vm10, %v932_v56, %v933_v55  ;;  %v616_v61 = vsel %vm443_vm10, %v933_v55, %v602_v57 }
 0x1b4   : > { %646 = vmatpush.msra.mxu2 %v615_v60  ;;  %666 = vmatpush.msra.mxu3 %v616_v61 }
 0x1b5   : > { %585 = vperm.xlu2 %934, %v582_v58   ;;  %830 = vmatmul.msk.f32.vlgmr.msra.gmra.mxu2 %vm627_vm12, %v581_v59 }
 0x1b6   : > { %298 = vperm.xlu1 %935, %v285_v62   ;;  %715 = vperm.xlu0 %853, %v712_v0  }
 0x1b7   : > { %831 = vmatmul.msk.f32.vlgmr.msra.gmra.mxu3 %vm627_vm12, %v581_v59 }
 0x1ff   : > { %v690_v3 = vpop.permute.xlu2 %689 }
 0x207   : > { %v707_v16 = vpop.permute.xlu2 %706 }
 0x20f   : > { %v586_v29 = vpop.permute.xlu2 %585 }
 0x217   : > { %v677_v1 = vpop.permute.xlu0 %676 }
 0x218   : > { %v679_v2 = vpop.permute.xlu1 %678  ;;  %v684_v63 = vmax.f32 %v671_v4, %v677_v1 }
 0x219   : > { %v680_v5 = vsel %vm410_vm3, %v677_v1, %v679_v2  ;;  %v686_v12 = vmax.f32 %v673_v6, %v679_v2 }
 0x21a   : > { %v685_v9 = vmax.f32 %v672_v40, %v680_v5  ;;  %v700_v13 = vmax.f32 %v684_v63, %v690_v3 }
 0x21c   : > { %v709_v18 = vmul.f32 %v707_v16, %v700_v13 }
 0x220   : > { %v694_v7 = vpop.permute.xlu1 %693  ;;  %v692_v8 = vpop.permute.xlu0 %691 }
 0x221   : > { %v695_v10 = vsel %vm425_vm9, %v690_v3, %v692_v8  ;;  %v696_v11 = vsel %vm425_vm9, %v692_v8, %v694_v7 }
 0x222   : > { %v701_v14 = vmax.f32 %v685_v9, %v695_v10  ;;  %v702_v15 = vmax.f32 %v686_v12, %v696_v11 }
 0x224   : > { %v710_v17 = vmul.f32 %v707_v16, %v701_v14  ;;  %v711_v19 = vmul.f32 %v707_v16, %v702_v15 }
 0x228   : > { %v716_v20 = vpop.permute.xlu0 %715  ;;  %v299_v24 = vpop.permute.xlu1 %298 }
 0x229   : > { %v718_v21 = vadd.f32 %v716_v20, %v709_v18  ;;  %v719_v22 = vadd.f32 %v716_v20, %v710_v17  ;;  %v720_v41 = vadd.f32 %v716_v20, %v711_v19  ;;  %v344_v42 = vadd.f32 %v343_v23, %v299_v24 }
 0x22a   : > { %v370_v26 = vadd.f32 %v369_v25, %v299_v24 }
 0x22b   : > { %726 = vrot.lane.b32.xlu1 %v719_v22, %s952_s17  ;;  %724 = vrot.lane.b32.xlu0 %v718_v21, %s952_s17  ;;  %v741_v27 = vrot.slane %v344_v42, 4 }
 0x22c   : > { %728 = vrot.lane.b32.xlu2 %v720_v41, %s952_s17  ;;  %v744_v30 = vrot.slane %v370_v26, 4 }
 0x22d   : > { %v742_v36 = vsel %vm315_vm0, %v740_v28, %v741_v27 }
 0x22e   : > { %v745_v40 = vsel %vm315_vm0, %v743_v35, %v744_v30 }
 0x238   : > { %v648_v31 = vpop.f32.mrf.mxu2 }
 0x239   : > { %v649_v32 = vadd.f32 %v648_v31, %v586_v29 }
 0x23a   : > { %v668_v37 = vpop.f32.mrf.mxu3 }
 0x23b   : > { %v750_v38 = vadd.f32 %v742_v36, %v649_v32  ;;  %v669_v39 = vadd.f32 %v668_v37, %v586_v29 }
 0x23d   : > { %754 = vst [vmem:[%s278_s16] sm:$0xff] %v750_v38  ;;  %v751_v6 = vadd.f32 %v745_v40, %v669_v39 }
 0x23f   : > { %755 = vst [vmem:[%s278_s16 + $0x8] sm:$0xff] %v751_v6 }
 0x286   : > { %v729_v43 = vpop.permute.xlu2 %728 }
 0x29d   : > { %v727_v44 = vpop.permute.xlu1 %726  ;;  %v725_v45 = vpop.permute.xlu0 %724 }
 0x29e   : > { %v731_v46 = vsel %vm443_vm10, %v727_v44, %v729_v43  ;;  %v730_v47 = vsel %vm443_vm10, %v725_v45, %v727_v44 }
 0x29f   : > { %v735_v48 = vsel %vm552_vm7, %v731_v46, %v1110_v34  ;;  %v734_v49 = vsel %vm552_vm7, %v730_v47, %v1108_v33 }
 0x2a0   : > { %v753_v50 = vadd.f32 %v744_v30, %v735_v48  ;;  %v752_v51 = vadd.f32 %v741_v27, %v734_v49 }
 0x2a2   : > { %757 = vst [vmem:[%s278_s16 + $0x18] sm:$0xf] %v753_v50 }
 0x2a3   : > { %756 = vst [vmem:[%s278_s16 + $0x10] sm:$0xf] %v752_v51 }
 0x2a4 PF: > { %s17_s24 = sadd.s32 1, %s942_s24  }
 0x2a5   : > { %p14_p4 = scmp.ge.s32.totalorder %s17_s24, 4  }
 0x2a7   :  { %16 = sbr.rel (!%p14_p4) target bundleno = 1 (0x1), region = 78 }

</bundles_post_ra>
